<compile_context>
chip_gen: v7x
topology: tpu7x:2x2x1
jax: 0.10.0
libtpu: 0.0.40
codegen_flags: <defaults>
</compile_context>

<pallas_src>
import jax
import jax.numpy as jnp
from jax.experimental import pallas as pl
from jax.experimental.pallas import tpu as pltpu

# ---- static configuration (small, TPU-friendly stand-ins for 512x512 / COCO) ----
S        = 32            # internal resolution (analogue of the 512x512 resize)
HW       = S * S         # 1024 flattened pixels
TILE     = 256           # lane-dense tile -> grid=(4,); at 512x512 use 16K-64K (4-16 steps)
C_IMG    = 3             # input image channels
C_PAD    = 4             # channels padded to 4 (block dim == full array dim, legal)
C_EMB    = 32            # embedding dim (pixel decoder output)
NUM_Q    = 16            # object queries
NUM_CLS  = 8             # foreground classes (+1 "no object")
THRESH   = 0.8           # same default threshold as the torch module


def _m2f_kernel(qw_ref, img_ref, out_ref):
    # qw_ref:  (NUM_Q, C_PAD) bf16  fused (queries @ pixel-embedding weight),
    #                               rows already zeroed for dropped queries
    # img_ref: (C_PAD, TILE)  uint8 channel-padded tile of the flattened image
    # out_ref: (1, TILE)      uint8 union-of-kept-instances binary mask

    # uint8 -> bf16 upcast on the VPU (hidden under DMA); MXU dot in bf16 with
    # f32 accumulation.  Pixel values 0..255 are exact in bf16.
    img = img_ref[...].astype(jnp.float32).astype(jnp.bfloat16)      # (C_PAD, TILE)
    logits = jnp.dot(qw_ref[...], img,
                     preferred_element_type=jnp.float32)             # (Q, TILE) f32

    # sigmoid(x) > 0.5  <=>  x > 0; dropped (zeroed) queries give logit == 0
    # and therefore fail the strict > 0 test (equivalent to the old -inf path).
    union = jnp.max(logits, axis=0, keepdims=True) > 0.0             # OR over queries (XLU reduce)
    out_ref[...] = union.astype(out_ref.dtype)


def mask2former_union_mask(qw, img_flat):
    """qw (Q, C_PAD) bf16 (keep-gated), img_flat (C_PAD, HW) uint8 -> (1, HW) uint8 mask."""
    grid = (HW // TILE,)   # 4 steps; keep 4-16 steps when scaling to 512x512
    return pl.pallas_call(
        _m2f_kernel,
        out_shape=jax.ShapeDtypeStruct((1, HW), jnp.uint8),
        grid_spec=pltpu.PrefetchScalarGridSpec(
            num_scalar_prefetch=0,
            grid=grid,
            in_specs=[
                pl.BlockSpec((NUM_Q, C_PAD), lambda i: (0, 0)),
                pl.BlockSpec((C_PAD, TILE),  lambda i: (0, i)),
            ],
            out_specs=pl.BlockSpec((1, TILE), lambda i: (0, i)),
        ),
        compiler_params=pltpu.CompilerParams(
            dimension_semantics=("parallel",)),   # lets v7x's two TCs split the steps
    )(qw, img_flat)


def forward(image_u8, wpix, q, wcls):
    """Mirror of Mask2Former.forward: image (H, W, 3) uint8 -> objects_mask (H, W, 3) uint8 of 0/1."""
    H, W, _ = image_u8.shape

    # resize to internal resolution (stand-in for cv2.resize(image, (512, 512)))
    # TODO(synk): cv2.resize is bilinear; nearest-neighbor resize used here as plain-JAX glue.
    # TODO(synk): at real scale fold this gather/transpose/pad into the kernel
    # (PrefetchScalarGridSpec index tables + pl.Element row gather) -- these XLA
    # passes touch more HBM than the kernel itself at 512x512.
    ys = (jnp.arange(S) * H) // S
    xs = (jnp.arange(S) * W) // S
    img_res = image_u8[ys][:, xs]                                   # (S, S, 3) uint8
    img_flat = img_res.reshape(HW, C_IMG).T                         # (3, HW) uint8
    img_pad = jnp.zeros((C_PAD, HW), jnp.uint8).at[:C_IMG].set(img_flat)

    # ---- grid-invariant pieces hoisted out of the kernel (tiny, run once) ----
    # class head: logits -> softmax -> max foreground score per query -> keep flag
    cls_logits = q @ wcls                                           # (Q, NUM_CLS+1)
    probs = jax.nn.softmax(cls_logits, axis=-1)
    scores = jnp.max(probs[:, :NUM_CLS], axis=-1, keepdims=True)    # drop "no object"
    keep = (scores >= THRESH).astype(jnp.float32)                   # (Q, 1); bbox[-1] < thr -> skip

    # matmul fusion: (q @ wpix) @ img == q @ (wpix @ img)  (pixel decoder is linear)
    # keep gate folded in by zeroing dropped-query rows (strict >0 test in-kernel).
    qw = (q @ wpix) * keep                                          # (Q, C_IMG)
    qw_pad = jnp.zeros((NUM_Q, C_PAD), jnp.bfloat16)
    qw_pad = qw_pad.at[:, :C_IMG].set(qw.astype(jnp.bfloat16))

    union = mask2former_union_mask(qw_pad, img_pad)                 # (1, HW) uint8
    mask = union.reshape(S, S)

    # resize the binary mask back to (H, W)  (objects_mask = cv2.resize(objects_mask, (W, H)))
    ys_b = (jnp.arange(H) * S) // H
    xs_b = (jnp.arange(W) * S) // W
    mask_full = mask[ys_b][:, xs_b]                                 # (H, W) uint8
    objects_mask = jnp.repeat(mask_full[..., None], 3, axis=-1)     # (H, W, 3) uint8 of 0/1
    return objects_mask


if __name__ == "__main__":
    key = jax.random.PRNGKey(0)
    k_img, k_pix, k_q, k_cls = jax.random.split(key, 4)

    # deterministic synthetic "weights" (shapes implied by the Mask2Former heads)
    wpix = 0.3 * jax.random.normal(k_pix, (C_EMB, C_IMG), jnp.float32)
    q    = 0.3 * jax.random.normal(k_q,   (NUM_Q, C_EMB), jnp.float32)
    wcls = 0.3 * jax.random.normal(k_cls, (C_EMB, NUM_CLS + 1), jnp.float32)

    # small uint8 input image, HWC like the torch module (cv2) expects
    image = jax.random.randint(k_img, (24, 40, 3), 0, 256, dtype=jnp.int32).astype(jnp.uint8)

    objects_mask = forward(image, wpix, q, wcls)
    jax.block_until_ready(objects_mask)
    assert objects_mask.shape == (24, 40, 3) and objects_mask.dtype == jnp.uint8
    print("KERNEL_OK")
</pallas_src>

<mosaic_0001>
module attributes {stable_mosaic.version = 11 : i64} {
  func.func @_m2f_kernel(%arg0: i32, %arg1: memref<16x4xbf16, #tpu.memory_space<vmem>>, %arg2: memref<4x256xi8, #tpu.memory_space<vmem>>, %arg3: memref<1x256xi8, #tpu.memory_space<vmem>>) attributes {dimension_semantics = [#tpu.dimension_semantics<parallel>], iteration_bounds = array<i64: 4>, scalar_prefetch = 0 : i64, scratch_operands = 0 : i64, tpu.core_type = #tpu.core_type<tc>, window_params = [{pipeline_mode = #tpu.pipeline_mode<synchronous>, transform_indices = @transform_0, window_bounds = array<i64: 16, 4>}, {transform_indices = @transform_1, window_bounds = array<i64: 4, 256>}, {transform_indices = @transform_2, window_bounds = array<i64: 1, 256>}]} {
    %c0 = arith.constant 0 : index
    %c0_0 = arith.constant 0 : index
    %0 = vector.load %arg2[%c0, %c0_0] : memref<4x256xi8, #tpu.memory_space<vmem>>, vector<4x256xi8>
    %1 = arith.uitofp %0 : vector<4x256xi8> to vector<4x256xf32>
    %2 = arith.truncf %1 : vector<4x256xf32> to vector<4x256xbf16>
    %c0_1 = arith.constant 0 : index
    %c0_2 = arith.constant 0 : index
    %3 = vector.load %arg1[%c0_1, %c0_2] : memref<16x4xbf16, #tpu.memory_space<vmem>>, vector<16x4xbf16>
    %cst = arith.constant dense<0.000000e+00> : vector<16x256xf32>
    %4 = tpu.matmul %3, %2, %cst {dimension_numbers = #tpu.dot_dimension_numbers<[1], [0], [0], [1], [0, 0, 1, 1], [], []>} : vector<16x4xbf16>, vector<4x256xbf16>, vector<16x256xf32> -> vector<16x256xf32>
    %cst_3 = arith.constant dense<0xFF800000> : vector<256xf32>
    %5 = vector.multi_reduction <maximumf>, %4, %cst_3 [0] : vector<16x256xf32> to vector<256xf32>
    %6 = vector.shape_cast %5 : vector<256xf32> to vector<1x256xf32>
    %cst_4 = arith.constant 0.000000e+00 : f32
    %7 = vector.broadcast %cst_4 : f32 to vector<1x256xf32>
    %8 = arith.cmpf ogt, %6, %7 : vector<1x256xf32>
    %9 = arith.extui %8 : vector<1x256xi1> to vector<1x256xi8>
    %c0_5 = arith.constant 0 : index
    %c0_6 = arith.constant 0 : index
    %10 = vector.load %arg3[%c0_5, %c0_6] : memref<1x256xi8, #tpu.memory_space<vmem>>, vector<1x256xi8>
    tpu.vector_store %arg3[%c0_5, %c0_6], %9 {strides = array<i32>} : memref<1x256xi8, #tpu.memory_space<vmem>>, vector<1x256xi8>,
    return
  }
  func.func @transform_0(%arg0: i32) -> (i32, i32) {
    %c0_i32 = arith.constant 0 : i32
    %c0_i32_0 = arith.constant 0 : i32
    %c0_i32_1 = arith.constant 0 : i32
    return %c0_i32, %c0_i32_0 : i32, i32
  }
  func.func @transform_1(%arg0: i32) -> (i32, i32) {
    %c0_i32 = arith.constant 0 : i32
    %c0_i32_0 = arith.constant 0 : i32
    return %c0_i32, %arg0 : i32, i32
  }
  func.func @transform_2(%arg0: i32) -> (i32, i32) {
    %c0_i32 = arith.constant 0 : i32
    %c0_i32_0 = arith.constant 0 : i32
    return %c0_i32, %arg0 : i32, i32
  }
}

</mosaic_0001>

<bundles_post_ra>
// kernel: tpu_custom_call.1
= control target key start
LH: loop header
LB: loop body
LE: loop exit
PB: predicated region body
PF: predicated region fallthrough
CT: control target
= control target key end

     0   :  { %7 = vsyncpa [#allocation3], 0  ;;  %s595_s0 = inlined_call_operand.vmem [shape: bf16[16,4], index: 0, kind: input, shape index: {}]   ;;  %s596_s1 = inlined_call_operand.vmem [shape: u8[4,1024], index: 1, kind: input, shape index: {}]   ;;  %s597_s2 = inlined_call_operand.hbm [shape: u8[1,1024], index: 2, kind: output, shape index: {}]  }
   0x1   :  { %9 = vsyncpa [#allocation3 + $0x1], 0  ;;  %s489_s9 = smov 0   ;;  %s491_s10 = smov 0  }
   0x2   :  { %s493_s11 = smov 0   ;;  %s495_s12 = smov 0  }
   0x3 LB: > { %s510_s13 = sadd.s32 4294967295, %s469_s12   ;;  %s347_s14 = sadd.s32 4294967294, %s469_s12   ;;  %s469_s12 = sphi %s495_s12, %s603_s12   ;;  %s465_s11 = sphi %s493_s11, %s602_s11   ;;  %s461_s10 = sphi %s491_s10, %s601_s10   ;;  %s457_s9 = sphi %s489_s9, %s600_s9  }
   0x4   : > { %s514_s15 = sadd.s32 1, %s469_s12   ;;  %s69_s16 = sadd.s32 1, %s465_s11 }
   0x5   : > { %s66_s17 = ssub.s32 %s469_s12, %s514_s15  ;;  %p79_p0 = scmp.ne.s32.totalorder %s465_s11, %s461_s10 }
   0x6   : > { %p67_p1 = scmp.eq.s32.totalorder %s66_s17, 0  ;;  %p80_p2 = scmp.eq.s32.totalorder %s510_s13, 3 }
   0x7   : > { %p85_p3 = scmp.ne.s32.totalorder %s461_s10, %s457_s9  ;;  %p86_p4 = scmp.eq.s32.totalorder %s347_s14, 3 }
   0x8   : > { %s525_s18 = scalar_select %p67_p1, %s465_s11, %s69_s16  }
   0x9   : > { %p527_p5 = por %p80_p2, %p79_p0  ;;  %p531_p6 = por %p86_p4, %p85_p3 }
   0xa   : > { %p350_p7 = scmp.ge.s32.totalorder %s469_s12, 1  ;;  %p115_p8 = scmp.lt.s32.totalorder %s469_s12, 5 }
   0xc   : > { %p116_p9 = pnand %p350_p7, %p115_p8 }
   0xd   : > { %s352_s21 = sshll.u32 (!%p116_p9), %s510_s13, 1  ;;  %v471_v0 = vmov (!%p116_p9), 0   ;;  %vm170_vm0 = vcmask (!%p116_p9), 1041408   ;;  %v406_v6 = vld [vmem:[%s595_s0] sm:$0xff] (!%p116_p9)   ;;  %vm166_vm1 = vcmask (!%p116_p9), 31744   ;;  %v239_v19 = vlaneseq (!%p116_p9)  ;;  %s133_s27 = sand.u32 (!%p116_p9), 1, %s461_s10  }
   0xe   : > { %119 = sbr.rel (%p116_p9) target bundleno = 290 (0x122), region = 28  ;;  %p137_p10 = scmp.lt.s32.totalorder (!%p116_p9), %s352_s21, 7  ;;  %209 = vmatprep.mubr.bf16.mxu0 (!%p116_p9), %v471_v0  ;;  %v472_v27 = vmov (!%p116_p9), 1966171168   ;;  %vm266_vm6 = vcmask (!%p116_p9), 1040384   ;;  %vm269_vm8 = vcmask (!%p116_p9), 1041409  }
   0xf   : > { %v240_v24 = vshrl.u32 (!%p116_p9), %v239_v19, 7  ;;  %v253_v28 = vunpack.c.l.s4 (!%p116_p9), %v472_v27  ;;  %s351_s28 = sshll.u32 (!%p116_p9), %s133_s27, 1  ;;  %vm267_vm7 = vsmask.f32 (!%p116_p9), 0  ;;  %vm270_vm9 = vsmask.f32 (!%p116_p9), 1024 }
  0x10   : > { %vm268_vm12 = vmand (!%p116_p9), %vm266_vm6, %vm267_vm7  ;;  %s364_s29 = sshll.u32 (!%p116_p9), %s510_s13, 5  ;;  %s135_s30 = scalar_lea.vmem (!%p116_p9), [#allocation2], %s351_s28 }
  0x11   : > { %v241_v29 = vsub.s32 (!%p116_p9), 0, %v240_v24  ;;  %v245_v30 = vsub.s32 (!%p116_p9), 2, %v240_v24  ;;  %v254_v31 = vunpack.c.0.s8 (!%p116_p9), %v253_v28  ;;  %vm271_vm13 = vmand (!%p116_p9), %vm269_vm8, %vm270_vm9  ;;  %s291_s3 = sshll.u32 (!%p116_p9), %s135_s30, 4  ;;  %v273_v40 = vld [vmem:[%s135_s30] sm:$0x3] (!%p116_p9)  ;;  %s551_s6 = scalar_lea.hbm (!%p116_p9), %s597_s2, %s364_s29  ;;  %s553_s3 = int_to_ptr.vmem [resolvable:$true] %s291_s3 }
  0x12   : > { %vm272_vm14 = vmor (!%p116_p9), %vm271_vm13, %vm268_vm12  ;;  %s277_s7 = scalar_lea.sflag (!%p116_p9), [#allocation3], %s133_s27  ;;  %s407_s8 = scalar_lea.vmem (!%p116_p9), %s553_s3, 32 }
  0x13   : > { %v257_v35 = vsub.s32 (!%p116_p9), %v254_v31, %v240_v24  ;;  %p408_p11 = scmp.ne.s32.totalorder (!%p116_p9), %s553_s3, %s407_s8  ;;  %s473_s13 = smov (!%p116_p9), [#allocation2]  }
  0x14   : > { %s411_s14 = sshll.u32 (!%p116_p9), %s473_s13, 4  ;;  %s412_s14 = int_to_ptr.vmem [resolvable:$false] %s411_s14 }
  0x15   : > { %s605_s21 = smov (!%p137_p10, %s352_s21), 7  ;;  %p409_p12 = pnand %p408_p11, %p527_p5 }
  0x16   : > { %s139_s24 = scalar_lea.vmem %s596_s1, %s605_s21  ;;  %s413_s16 = scalar_lea.vmem %s412_s14, 64 }
  0x17   : > { %v353_v1 = vld.sshfl [vmem:[%s139_s24] sm:$0x5 pattern:$0x73625140]  ;;  %p410_p13 = pneg %p409_p12  ;;  %p414_p0 = scmp.lt.s32.totalorder %s553_s3, %s412_s14 }
  0x18   : > { %v153_v2 = vunpack.c.l.u8.bf16 %v353_v1  ;;  %p415_p1 = scmp.lt.s32.totalorder %s413_s16, %s407_s8 }
  0x1a   : > { %v356_v3 = vcombine.high %v153_v2, %v153_v2  ;;  %v355_v4 = vcombine.low %v153_v2, %v153_v2  ;;  %p416_p2 = por %p415_p1, %p414_p0 }
  0x1c   : > { %357 = vmatprep.subr.msk.bf16.mxu0 %vm170_vm0, %v356_v3  ;;  %v172_v5 = vsel %vm170_vm0, %v355_v4, 0  ;;  %p417_p3 = pnand %p416_p2, %p410_p13 }
  0x1d   : > { %178 = vmatpush1.bf16.msra.mxu0 %v172_v5 }
  0x20   : > { %358 = vmatmul.mubr.msk.bf16.vlgmr.msra.gmra.mrb[0].mxu0 %vm166_vm1, %v406_v6 }
  0xf3   : > { %v211_v7 = vpop.f32.mrb[0].mxu0 }
  0xf4   : > { %v213_v8 = vpop.f32.mrb[1].mxu0 }
  0xf5   : > { %v215_v9 = vpop.f32.mrb[2].mxu0 }
  0xf6   : > { %v220_v10 = vmax.f32 %v211_v7, %v215_v9  ;;  %v217_v11 = vpop.f32.mrb[3].mxu0 }
  0xf7   : > { %v227_v12 = vmax.f32 %v213_v8, %v217_v11 }
  0xf8   : > { %v221_v13 = vrot.slane %v220_v10, 4 }
  0xf9   : > { %v228_v14 = vrot.slane %v227_v12, 4 }
  0xfa   : > { %v222_v15 = vmax.f32 %v220_v10, %v221_v13 }
  0xfb   : > { %v229_v16 = vmax.f32 %v227_v12, %v228_v14 }
  0xfc   : > { %v223_v17 = vrot.slane %v222_v15, 2 }
  0xfd   : > { %v230_v18 = vrot.slane %v229_v16, 2 }
  0xfe   : > { %v224_v20 = vmax.f32 %v222_v15, %v223_v17 }
  0xff   : > { %v231_v21 = vmax.f32 %v229_v16, %v230_v18 }
 0x100   : > { %v225_v22 = vrot.slane %v224_v20, 1 }
 0x101   : > { %v232_v23 = vrot.slane %v231_v21, 1 }
 0x102   : > { %v226_v25 = vmax.f32 %v224_v20, %v225_v22 }
 0x103   : > { %v233_v26 = vmax.f32 %v231_v21, %v232_v23 }
 0x104   : > { %vm234_vm2 = vcmp.gt.f32.partialorder %v226_v25, 0.0 }
 0x105   : > { %vm235_vm3 = vcmp.gt.f32.partialorder %v233_v26, 0.0 }
 0x106   : > { %vm236_vm4 = vmpackc.low %vm235_vm3, %vm234_vm2 }
 0x107   : > { %vm237_vm5 = vmpackc.even %vm236_vm4, %vm236_vm4 }
 0x108   : > { %v238_v32 = vsel %vm237_vm5, 16843009, %v471_v0 }
 0x109   : > { %v242_v33 = vrot.slane %v238_v32, %v241_v29  ;;  %v246_v34 = vrot.slane %v238_v32, %v245_v30 }
 0x10b   : > { %vm247_vm10 = vnez %v242_v33  ;;  %vm248_vm11 = vnez %v246_v34 }
 0x10c   : > { %v249_v36 = vsel %vm247_vm10, 16843009, %v471_v0  ;;  %v250_v37 = vsel %vm248_vm11, 16843009, %v471_v0 }
 0x10d   : > { %v251_v38 = vcombine.low %v249_v36, %v250_v37 }
 0x10f   : > { %v258_v39 = vrot.slane %v251_v38, %v257_v35 }
 0x111   : > { %v265_v41 = vrot.slane %v258_v39, %v257_v35 }
 0x113   : > { %v274_v42 = vsel %vm272_vm14, %v265_v41, %v273_v40 }
 0x114   : > { %275 = vst [vmem:[%s135_s30] sm:$0x3] %v274_v42 }
 0x115   : > { %420 = shalt.err (!%p417_p3)
}
 0x116   : > { %s421_s17 = scalar_lea.hbm %s551_s6, 32  ;;  %s425_s23 = scalar_lea.hbm %s597_s2, 128 }
 0x117   : > { %p422_p4 = scmp.ne.s32.totalorder %s551_s6, %s421_s17  ;;  %p426_p9 = scmp.lt.u32.totalorder %s551_s6, %s597_s2 }
 0x118   : > { %p427_p10 = scmp.lt.u32.totalorder %s425_s23, %s421_s17  ;;  %p429_p12 = scmp.lt.u32.totalorder %s421_s17, %s551_s6 }
 0x119   : > { %p423_p7 = pnand %p422_p4, %p527_p5 }
 0x11a   : > { %p428_p11 = por %p427_p10, %p426_p9 }
 0x11b   : > { %p424_p8 = pneg %p423_p7 }
 0x11c   : > { %p430_p13 = por %p429_p12, %p428_p11 }
 0x11e   : > { %p431_p0 = pnand %p430_p13, %p424_p8 }
 0x120   : > { %434 = shalt.err (!%p431_p0)
}
 0x121   : > { %365 = dma.vmem_to_hbm [thread:$0]  (%p527_p5), %s553_s3, 32, %s551_s6, %s277_s7  }
 0x122 PF: > { %p371_p1 = scmp.ge.s32.totalorder %s469_s12, 2  ;;  %s303_s26 = sand.u32 1, %s457_s9  }
 0x123   : > { %s304_s27 = scalar_lea.sflag [#allocation3], %s303_s26 }
 0x124   : > { %p368_p2 = pnand %p371_p1, %p531_p6 }
 0x126   : > { %452 = dma.done.wait (!%p368_p2), %s304_s27, 32  }
 0x127   : > { %454 = vsyncadd (!%p368_p2), %s304_s27, 4294967264  ;;  %p12_p3 = scmp.ge.s32.totalorder %s514_s15, 6   ;;  %s600_s9 = smov %s461_s10 }
 0x128   : > { %s601_s10 = smov %s465_s11  ;;  %s602_s11 = smov %s525_s18 }
 0x129   : > { %s603_s12 = smov %s514_s15  ;;  %14 = sbr.rel (!%p12_p3) target bundleno = 3 (0x3), region = 63 }
 0x130   :  { %309 = vsyncpa [#allocation3], 1 }
 0x131   :  { %311 = vsyncpa [#allocation3 + $0x1], 1 }

</bundles_post_ra>
